<compile_context>
chip_gen: v7x
topology: tpu7x:2x2x1
jax: 0.10.0
libtpu: 0.0.40
codegen_flags: <defaults>
</compile_context>

<pallas_src>
import math
import functools

import jax
import jax.numpy as jnp
from jax.experimental import pallas as pl
from jax.experimental.pallas import tpu as pltpu


def _mha_kernel(x_ref, wqkv_ref, bqkv_ref, wo_ref, bo_ref, out_ref, *,
                num_heads, head_dim, seq_len):
    H, hd, S = num_heads, head_dim, seq_len
    D = H * hd

    # ---- fused Q/K/V projection: one MXU push, contraction depth D, N = 3D -----
    x = x_ref[...]                                                     # (S, D) bf16
    qkv = jnp.dot(x, wqkv_ref[...],
                  preferred_element_type=jnp.float32) + bqkv_ref[...]  # (S, 3D) f32

    # 128-lane-aligned splits; the softmax scale is already folded into the Q part
    # of the packed weights, so no per-element multiply here.
    q = qkv[:, :D].astype(jnp.bfloat16)
    k = qkv[:, D:2 * D].astype(jnp.bfloat16)
    v = qkv[:, 2 * D:].astype(jnp.bfloat16)

    # Head-major (H, S, hd) operands built once; attention matmuls below are single
    # H-batched dot_generals (no per-head 16-deep MXU pushes).
    def heads(t):
        return jnp.stack([t[:, h * hd:(h + 1) * hd] for h in range(H)], axis=0)

    qh = heads(q)                                                      # (H, S, hd)
    kh = heads(k)
    vh = heads(v)

    s = jnp.einsum("hqd,hkd->hqk", qh, kh,
                   preferred_element_type=jnp.float32)                 # (H, S, S) f32
    s = s - jnp.max(s, axis=-1, keepdims=True)
    p = jnp.exp(s)
    w = p * pl.reciprocal(jnp.sum(p, axis=-1, keepdims=True), approx=True)
    # TODO(synk): attn_drop (Dropout p=0.1) is identity in eval mode; training-time
    # dropout would need pltpu.prng_seed/prng_random_bits masking of `w` here.

    oh = jnp.einsum("hqk,hkd->hqd", w.astype(jnp.bfloat16), vh,
                    preferred_element_type=jnp.float32)                # (H, S, hd) f32

    # Reassemble the (S, H*hd) slab so the output projection is ONE depth-D matmul
    # instead of H depth-hd matmuls + f32 accumulations.
    o = jnp.concatenate([oh[h] for h in range(H)], axis=-1).astype(jnp.bfloat16)  # (S, D)
    out = jnp.dot(o, wo_ref[...],
                  preferred_element_type=jnp.float32) + bo_ref[...]    # (S, D) f32
    out_ref[...] = out.astype(out_ref.dtype)
    # TODO(synk): for production S (>~1-2K) add a KV-tile grid axis with an online
    # (flash-style) softmax and set CompilerParams(vmem_limit_bytes=...) so the
    # (H, S, S) scores and the f32 qkv slab fit v7x's 64 MiB VMEM.


def pack_params(params, *, num_heads, compute_dtype=jnp.bfloat16):
    """One-time repack of PyTorch-style (out,in) Linear weights into kernel layout.

    The 1/sqrt(head_dim) softmax scale is folded into the Q columns and Q bias here,
    off the hot path.
    """
    D = params["wq"].shape[0]
    hd = D // num_heads
    scale = 1.0 / math.sqrt(hd)
    wqkv = jnp.concatenate(
        [params["wq"].T * scale, params["wk"].T, params["wv"].T], axis=1
    ).astype(compute_dtype)                                            # (D, 3D)
    bqkv = jnp.concatenate(
        [params["bq"] * scale, params["bk"], params["bv"]]
    ).reshape(1, 3 * D).astype(jnp.float32)                            # (1, 3D)
    wo = params["wo"].T.astype(compute_dtype)                          # (D, D)
    bo = params["bo"].reshape(1, D).astype(jnp.float32)                # (1, D)
    return {"wqkv": wqkv, "bqkv": bqkv, "wo": wo, "bo": bo}


def multi_head_attention(x, packed, *, num_heads):
    """x: (B, S, D) float32. packed: output of pack_params (kernel-layout weights)."""
    B, S, D = x.shape
    hd = D // num_heads
    assert hd * num_heads == D, "dim must be divisible by num_heads"

    kernel = functools.partial(_mha_kernel, num_heads=num_heads, head_dim=hd,
                               seq_len=S)

    return pl.pallas_call(
        kernel,
        out_shape=jax.ShapeDtypeStruct((B, S, D), jnp.float32),
        grid_spec=pltpu.PrefetchScalarGridSpec(
            num_scalar_prefetch=0,
            grid=(B,),                                                  # one batch elem / step
            in_specs=[
                pl.BlockSpec((None, S, D), lambda b: (b, 0, 0)),        # x[b]  (bf16)
                pl.BlockSpec((D, 3 * D), lambda b: (0, 0)),             # Wqkv (resident)
                pl.BlockSpec((1, 3 * D), lambda b: (0, 0)),             # bqkv
                pl.BlockSpec((D, D), lambda b: (0, 0)),                 # Wo
                pl.BlockSpec((1, D), lambda b: (0, 0)),                 # bo
            ],
            out_specs=pl.BlockSpec((None, S, D), lambda b: (b, 0, 0)),
        ),
        compiler_params=pltpu.CompilerParams(
            # independent batch elements: shards across v7x's 2 TensorCores,
            # neutral on single-TC v5e/v6e (~0.35us/extra step).
            dimension_semantics=("parallel",)),
    )(x.astype(jnp.bfloat16),                                           # bf16 activations: half the DMA
      packed["wqkv"], packed["bqkv"], packed["wo"], packed["bo"])


def _reference_mha(x, params, *, num_heads):
    """Plain-JAX f32 reference mirroring the PyTorch forward (eval mode)."""
    B, S, D = x.shape
    hd = D // num_heads
    q = x @ params["wq"].T + params["bq"]
    k = x @ params["wk"].T + params["bk"]
    v = x @ params["wv"].T + params["bv"]
    q = q.reshape(B, S, num_heads, hd).transpose(0, 2, 1, 3)
    k = k.reshape(B, S, num_heads, hd).transpose(0, 2, 1, 3)
    v = v.reshape(B, S, num_heads, hd).transpose(0, 2, 1, 3)
    scores = jnp.einsum("bhqd,bhkd->bhqk", q, k) / math.sqrt(hd)
    w = jax.nn.softmax(scores, axis=-1)
    out = jnp.einsum("bhqk,bhkd->bhqd", w, v)
    out = out.transpose(0, 2, 1, 3).reshape(B, S, D)
    return out @ params["wo"].T + params["bo"]


if __name__ == "__main__":
    # Small shapes consistent with the module (dim divisible by num_heads).
    # D = 128 keeps stores lane-dense; H = 8 preserves the multi-head structure.
    B, S, D, H = 2, 16, 128, 8

    key = jax.random.PRNGKey(0)
    keys = jax.random.split(key, 9)

    # PyTorch nn.Linear-style init: U(-1/sqrt(in), 1/sqrt(in)), weight shape (out, in).
    bound = 1.0 / math.sqrt(D)
    params = {
        "wq": jax.random.uniform(keys[0], (D, D), jnp.float32, -bound, bound),
        "bq": jax.random.uniform(keys[1], (D,), jnp.float32, -bound, bound),
        "wk": jax.random.uniform(keys[2], (D, D), jnp.float32, -bound, bound),
        "bk": jax.random.uniform(keys[3], (D,), jnp.float32, -bound, bound),
        "wv": jax.random.uniform(keys[4], (D, D), jnp.float32, -bound, bound),
        "bv": jax.random.uniform(keys[5], (D,), jnp.float32, -bound, bound),
        "wo": jax.random.uniform(keys[6], (D, D), jnp.float32, -bound, bound),
        "bo": jax.random.uniform(keys[7], (D,), jnp.float32, -bound, bound),
    }
    x = jax.random.normal(keys[8], (B, S, D), jnp.float32)

    packed = pack_params(params, num_heads=H)          # one-time repack (off hot path)
    out = multi_head_attention(x, packed, num_heads=H)
    out = jax.block_until_ready(out)

    ref = _reference_mha(x, params, num_heads=H)
    assert out.shape == (B, S, D)
    # bf16 MXU operands with f32 accumulation -> bf16-appropriate tolerance.
    assert jnp.allclose(out, ref, atol=3e-2, rtol=3e-2), "mismatch vs reference"

    print("KERNEL_OK")
</pallas_src>

<mosaic_0001>
module attributes {stable_mosaic.version = 11 : i64} {
  func.func @_mha_kernel(%arg0: i32, %arg1: memref<1x16x128xbf16, #tpu.memory_space<vmem>>, %arg2: memref<128x384xbf16, #tpu.memory_space<vmem>>, %arg3: memref<1x384xf32, #tpu.memory_space<vmem>>, %arg4: memref<128x128xbf16, #tpu.memory_space<vmem>>, %arg5: memref<1x128xf32, #tpu.memory_space<vmem>>, %arg6: memref<1x16x128xf32, #tpu.memory_space<vmem>>) attributes {dimension_semantics = [#tpu.dimension_semantics<parallel>], iteration_bounds = array<i64: 2>, scalar_prefetch = 0 : i64, scratch_operands = 0 : i64, tpu.core_type = #tpu.core_type<tc>, window_params = [{transform_indices = @transform_0, window_bounds = array<i64: 1, 16, 128>}, {pipeline_mode = #tpu.pipeline_mode<synchronous>, transform_indices = @transform_1, window_bounds = array<i64: 128, 384>}, {pipeline_mode = #tpu.pipeline_mode<synchronous>, transform_indices = @transform_2, window_bounds = array<i64: 1, 384>}, {pipeline_mode = #tpu.pipeline_mode<synchronous>, transform_indices = @transform_3, window_bounds = array<i64: 128, 128>}, {pipeline_mode = #tpu.pipeline_mode<synchronous>, transform_indices = @transform_4, window_bounds = array<i64: 1, 128>}, {transform_indices = @transform_5, window_bounds = array<i64: 1, 16, 128>}]} {
    %c0 = arith.constant 0 : index
    %c0_0 = arith.constant 0 : index
    %c0_1 = arith.constant 0 : index
    %0 = vector.load %arg1[%c0, %c0_0, %c0_1] : memref<1x16x128xbf16, #tpu.memory_space<vmem>>, vector<1x16x128xbf16>
    %1 = vector.shape_cast %0 : vector<1x16x128xbf16> to vector<16x128xbf16>
    %c0_2 = arith.constant 0 : index
    %c0_3 = arith.constant 0 : index
    %2 = vector.load %arg2[%c0_2, %c0_3] : memref<128x384xbf16, #tpu.memory_space<vmem>>, vector<128x384xbf16>
    %cst = arith.constant dense<0.000000e+00> : vector<16x384xf32>
    %3 = tpu.matmul %1, %2, %cst {dimension_numbers = #tpu.dot_dimension_numbers<[1], [0], [0], [1], [0, 0, 1, 1], [], []>} : vector<16x128xbf16>, vector<128x384xbf16>, vector<16x384xf32> -> vector<16x384xf32>
    %c0_4 = arith.constant 0 : index
    %c0_5 = arith.constant 0 : index
    %4 = vector.load %arg3[%c0_4, %c0_5] : memref<1x384xf32, #tpu.memory_space<vmem>>, vector<1x384xf32>
    %5 = vector.broadcast %4 : vector<1x384xf32> to vector<16x384xf32>
    %6 = arith.addf %3, %5 : vector<16x384xf32>
    %7 = vector.extract_strided_slice %6 {offsets = [0, 0], sizes = [16, 128], strides = [1, 1]} : vector<16x384xf32> to vector<16x128xf32>
    %8 = arith.truncf %7 : vector<16x128xf32> to vector<16x128xbf16>
    %9 = vector.extract_strided_slice %6 {offsets = [0, 128], sizes = [16, 128], strides = [1, 1]} : vector<16x384xf32> to vector<16x128xf32>
    %10 = arith.truncf %9 : vector<16x128xf32> to vector<16x128xbf16>
    %11 = vector.extract_strided_slice %6 {offsets = [0, 256], sizes = [16, 128], strides = [1, 1]} : vector<16x384xf32> to vector<16x128xf32>
    %12 = arith.truncf %11 : vector<16x128xf32> to vector<16x128xbf16>
    %13 = vector.extract_strided_slice %8 {offsets = [0, 0], sizes = [16, 16], strides = [1, 1]} : vector<16x128xbf16> to vector<16x16xbf16>
    %14 = vector.extract_strided_slice %8 {offsets = [0, 16], sizes = [16, 16], strides = [1, 1]} : vector<16x128xbf16> to vector<16x16xbf16>
    %15 = vector.extract_strided_slice %8 {offsets = [0, 32], sizes = [16, 16], strides = [1, 1]} : vector<16x128xbf16> to vector<16x16xbf16>
    %16 = vector.extract_strided_slice %8 {offsets = [0, 48], sizes = [16, 16], strides = [1, 1]} : vector<16x128xbf16> to vector<16x16xbf16>
    %17 = vector.extract_strided_slice %8 {offsets = [0, 64], sizes = [16, 16], strides = [1, 1]} : vector<16x128xbf16> to vector<16x16xbf16>
    %18 = vector.extract_strided_slice %8 {offsets = [0, 80], sizes = [16, 16], strides = [1, 1]} : vector<16x128xbf16> to vector<16x16xbf16>
    %19 = vector.extract_strided_slice %8 {offsets = [0, 96], sizes = [16, 16], strides = [1, 1]} : vector<16x128xbf16> to vector<16x16xbf16>
    %20 = vector.extract_strided_slice %8 {offsets = [0, 112], sizes = [16, 16], strides = [1, 1]} : vector<16x128xbf16> to vector<16x16xbf16>
    %21 = vector.shape_cast %13 : vector<16x16xbf16> to vector<1x16x16xbf16>
    %22 = vector.shape_cast %14 : vector<16x16xbf16> to vector<1x16x16xbf16>
    %23 = vector.shape_cast %15 : vector<16x16xbf16> to vector<1x16x16xbf16>
    %24 = vector.shape_cast %16 : vector<16x16xbf16> to vector<1x16x16xbf16>
    %25 = vector.shape_cast %17 : vector<16x16xbf16> to vector<1x16x16xbf16>
    %26 = vector.shape_cast %18 : vector<16x16xbf16> to vector<1x16x16xbf16>
    %27 = vector.shape_cast %19 : vector<16x16xbf16> to vector<1x16x16xbf16>
    %28 = vector.shape_cast %20 : vector<16x16xbf16> to vector<1x16x16xbf16>
    %29 = tpu.concatenate %21, %22, %23, %24, %25, %26, %27, %28 in 0 : vector<1x16x16xbf16>, vector<1x16x16xbf16>, vector<1x16x16xbf16>, vector<1x16x16xbf16>, vector<1x16x16xbf16>, vector<1x16x16xbf16>, vector<1x16x16xbf16>, vector<1x16x16xbf16> -> vector<8x16x16xbf16>
    %30 = vector.extract_strided_slice %10 {offsets = [0, 0], sizes = [16, 16], strides = [1, 1]} : vector<16x128xbf16> to vector<16x16xbf16>
    %31 = vector.extract_strided_slice %10 {offsets = [0, 16], sizes = [16, 16], strides = [1, 1]} : vector<16x128xbf16> to vector<16x16xbf16>
    %32 = vector.extract_strided_slice %10 {offsets = [0, 32], sizes = [16, 16], strides = [1, 1]} : vector<16x128xbf16> to vector<16x16xbf16>
    %33 = vector.extract_strided_slice %10 {offsets = [0, 48], sizes = [16, 16], strides = [1, 1]} : vector<16x128xbf16> to vector<16x16xbf16>
    %34 = vector.extract_strided_slice %10 {offsets = [0, 64], sizes = [16, 16], strides = [1, 1]} : vector<16x128xbf16> to vector<16x16xbf16>
    %35 = vector.extract_strided_slice %10 {offsets = [0, 80], sizes = [16, 16], strides = [1, 1]} : vector<16x128xbf16> to vector<16x16xbf16>
    %36 = vector.extract_strided_slice %10 {offsets = [0, 96], sizes = [16, 16], strides = [1, 1]} : vector<16x128xbf16> to vector<16x16xbf16>
    %37 = vector.extract_strided_slice %10 {offsets = [0, 112], sizes = [16, 16], strides = [1, 1]} : vector<16x128xbf16> to vector<16x16xbf16>
    %38 = vector.shape_cast %30 : vector<16x16xbf16> to vector<1x16x16xbf16>
    %39 = vector.shape_cast %31 : vector<16x16xbf16> to vector<1x16x16xbf16>
    %40 = vector.shape_cast %32 : vector<16x16xbf16> to vector<1x16x16xbf16>
    %41 = vector.shape_cast %33 : vector<16x16xbf16> to vector<1x16x16xbf16>
    %42 = vector.shape_cast %34 : vector<16x16xbf16> to vector<1x16x16xbf16>
    %43 = vector.shape_cast %35 : vector<16x16xbf16> to vector<1x16x16xbf16>
    %44 = vector.shape_cast %36 : vector<16x16xbf16> to vector<1x16x16xbf16>
    %45 = vector.shape_cast %37 : vector<16x16xbf16> to vector<1x16x16xbf16>
    %46 = tpu.concatenate %38, %39, %40, %41, %42, %43, %44, %45 in 0 : vector<1x16x16xbf16>, vector<1x16x16xbf16>, vector<1x16x16xbf16>, vector<1x16x16xbf16>, vector<1x16x16xbf16>, vector<1x16x16xbf16>, vector<1x16x16xbf16>, vector<1x16x16xbf16> -> vector<8x16x16xbf16>
    %47 = vector.extract_strided_slice %12 {offsets = [0, 0], sizes = [16, 16], strides = [1, 1]} : vector<16x128xbf16> to vector<16x16xbf16>
    %48 = vector.extract_strided_slice %12 {offsets = [0, 16], sizes = [16, 16], strides = [1, 1]} : vector<16x128xbf16> to vector<16x16xbf16>
    %49 = vector.extract_strided_slice %12 {offsets = [0, 32], sizes = [16, 16], strides = [1, 1]} : vector<16x128xbf16> to vector<16x16xbf16>
    %50 = vector.extract_strided_slice %12 {offsets = [0, 48], sizes = [16, 16], strides = [1, 1]} : vector<16x128xbf16> to vector<16x16xbf16>
    %51 = vector.extract_strided_slice %12 {offsets = [0, 64], sizes = [16, 16], strides = [1, 1]} : vector<16x128xbf16> to vector<16x16xbf16>
    %52 = vector.extract_strided_slice %12 {offsets = [0, 80], sizes = [16, 16], strides = [1, 1]} : vector<16x128xbf16> to vector<16x16xbf16>
    %53 = vector.extract_strided_slice %12 {offsets = [0, 96], sizes = [16, 16], strides = [1, 1]} : vector<16x128xbf16> to vector<16x16xbf16>
    %54 = vector.extract_strided_slice %12 {offsets = [0, 112], sizes = [16, 16], strides = [1, 1]} : vector<16x128xbf16> to vector<16x16xbf16>
    %55 = vector.shape_cast %47 : vector<16x16xbf16> to vector<1x16x16xbf16>
    %56 = vector.shape_cast %48 : vector<16x16xbf16> to vector<1x16x16xbf16>
    %57 = vector.shape_cast %49 : vector<16x16xbf16> to vector<1x16x16xbf16>
    %58 = vector.shape_cast %50 : vector<16x16xbf16> to vector<1x16x16xbf16>
    %59 = vector.shape_cast %51 : vector<16x16xbf16> to vector<1x16x16xbf16>
    %60 = vector.shape_cast %52 : vector<16x16xbf16> to vector<1x16x16xbf16>
    %61 = vector.shape_cast %53 : vector<16x16xbf16> to vector<1x16x16xbf16>
    %62 = vector.shape_cast %54 : vector<16x16xbf16> to vector<1x16x16xbf16>
    %63 = tpu.concatenate %55, %56, %57, %58, %59, %60, %61, %62 in 0 : vector<1x16x16xbf16>, vector<1x16x16xbf16>, vector<1x16x16xbf16>, vector<1x16x16xbf16>, vector<1x16x16xbf16>, vector<1x16x16xbf16>, vector<1x16x16xbf16>, vector<1x16x16xbf16> -> vector<8x16x16xbf16>
    "tpu.trace_start"() <{level = 10 : i32, message = "hqd,hkd->hqk"}> : () -> ()
    %cst_6 = arith.constant dense<0.000000e+00> : vector<8x16x16xf32>
    %64 = tpu.matmul %29, %46, %cst_6 {dimension_numbers = #tpu.dot_dimension_numbers<[2], [2], [1], [1], [0, 0, 0, 1, 1, 1], [0], [0]>} : vector<8x16x16xbf16>, vector<8x16x16xbf16>, vector<8x16x16xf32> -> vector<8x16x16xf32>
    "tpu.trace_stop"() : () -> ()
    %cst_7 = arith.constant dense<0xFF800000> : vector<8x16xf32>
    %65 = vector.multi_reduction <maximumf>, %64, %cst_7 [2] : vector<8x16x16xf32> to vector<8x16xf32>
    %66 = vector.shape_cast %65 : vector<8x16xf32> to vector<8x16x1xf32>
    %67 = vector.broadcast %66 : vector<8x16x1xf32> to vector<8x16x16xf32>
    %68 = arith.subf %64, %67 : vector<8x16x16xf32>
    %69 = math.exp %68 : vector<8x16x16xf32>
    %cst_8 = arith.constant dense<0.000000e+00> : vector<8x16xf32>
    %70 = vector.multi_reduction <add>, %69, %cst_8 [2] : vector<8x16x16xf32> to vector<8x16xf32>
    %71 = vector.shape_cast %70 : vector<8x16xf32> to vector<8x16x1xf32>
    %72 = tpu.reciprocal %71 {approx = true} : vector<8x16x1xf32> -> vector<8x16x1xf32>
    %73 = vector.broadcast %72 : vector<8x16x1xf32> to vector<8x16x16xf32>
    %74 = arith.mulf %69, %73 : vector<8x16x16xf32>
    %75 = arith.truncf %74 : vector<8x16x16xf32> to vector<8x16x16xbf16>
    "tpu.trace_start"() <{level = 10 : i32, message = "hqk,hkd->hqd"}> : () -> ()
    %cst_9 = arith.constant dense<0.000000e+00> : vector<8x16x16xf32>
    %76 = tpu.matmul %75, %63, %cst_9 {dimension_numbers = #tpu.dot_dimension_numbers<[2], [1], [1], [2], [0, 0, 0, 1, 1, 2], [0], [0]>} : vector<8x16x16xbf16>, vector<8x16x16xbf16>, vector<8x16x16xf32> -> vector<8x16x16xf32>
    "tpu.trace_stop"() : () -> ()
    %77 = vector.extract_strided_slice %76 {offsets = [0, 0, 0], sizes = [1, 16, 16], strides = [1, 1, 1]} : vector<8x16x16xf32> to vector<1x16x16xf32>
    %78 = vector.shape_cast %77 : vector<1x16x16xf32> to vector<16x16xf32>
    %79 = vector.extract_strided_slice %76 {offsets = [1, 0, 0], sizes = [1, 16, 16], strides = [1, 1, 1]} : vector<8x16x16xf32> to vector<1x16x16xf32>
    %80 = vector.shape_cast %79 : vector<1x16x16xf32> to vector<16x16xf32>
    %81 = vector.extract_strided_slice %76 {offsets = [2, 0, 0], sizes = [1, 16, 16], strides = [1, 1, 1]} : vector<8x16x16xf32> to vector<1x16x16xf32>
    %82 = vector.shape_cast %81 : vector<1x16x16xf32> to vector<16x16xf32>
    %83 = vector.extract_strided_slice %76 {offsets = [3, 0, 0], sizes = [1, 16, 16], strides = [1, 1, 1]} : vector<8x16x16xf32> to vector<1x16x16xf32>
    %84 = vector.shape_cast %83 : vector<1x16x16xf32> to vector<16x16xf32>
    %85 = vector.extract_strided_slice %76 {offsets = [4, 0, 0], sizes = [1, 16, 16], strides = [1, 1, 1]} : vector<8x16x16xf32> to vector<1x16x16xf32>
    %86 = vector.shape_cast %85 : vector<1x16x16xf32> to vector<16x16xf32>
    %87 = vector.extract_strided_slice %76 {offsets = [5, 0, 0], sizes = [1, 16, 16], strides = [1, 1, 1]} : vector<8x16x16xf32> to vector<1x16x16xf32>
    %88 = vector.shape_cast %87 : vector<1x16x16xf32> to vector<16x16xf32>
    %89 = vector.extract_strided_slice %76 {offsets = [6, 0, 0], sizes = [1, 16, 16], strides = [1, 1, 1]} : vector<8x16x16xf32> to vector<1x16x16xf32>
    %90 = vector.shape_cast %89 : vector<1x16x16xf32> to vector<16x16xf32>
    %91 = vector.extract_strided_slice %76 {offsets = [7, 0, 0], sizes = [1, 16, 16], strides = [1, 1, 1]} : vector<8x16x16xf32> to vector<1x16x16xf32>
    %92 = vector.shape_cast %91 : vector<1x16x16xf32> to vector<16x16xf32>
    %93 = tpu.concatenate %78, %80, %82, %84, %86, %88, %90, %92 in 1 : vector<16x16xf32>, vector<16x16xf32>, vector<16x16xf32>, vector<16x16xf32>, vector<16x16xf32>, vector<16x16xf32>, vector<16x16xf32>, vector<16x16xf32> -> vector<16x128xf32>
    %94 = arith.truncf %93 : vector<16x128xf32> to vector<16x128xbf16>
    %c0_10 = arith.constant 0 : index
    %c0_11 = arith.constant 0 : index
    %95 = vector.load %arg4[%c0_10, %c0_11] : memref<128x128xbf16, #tpu.memory_space<vmem>>, vector<128x128xbf16>
    %cst_12 = arith.constant dense<0.000000e+00> : vector<16x128xf32>
    %96 = tpu.matmul %94, %95, %cst_12 {dimension_numbers = #tpu.dot_dimension_numbers<[1], [0], [0], [1], [0, 0, 1, 1], [], []>} : vector<16x128xbf16>, vector<128x128xbf16>, vector<16x128xf32> -> vector<16x128xf32>
    %c0_13 = arith.constant 0 : index
    %c0_14 = arith.constant 0 : index
    %97 = vector.load %arg5[%c0_13, %c0_14] : memref<1x128xf32, #tpu.memory_space<vmem>>, vector<1x128xf32>
    %98 = vector.broadcast %97 : vector<1x128xf32> to vector<16x128xf32>
    %99 = arith.addf %96, %98 : vector<16x128xf32>
    %c0_15 = arith.constant 0 : index
    %c0_16 = arith.constant 0 : index
    %c0_17 = arith.constant 0 : index
    %100 = vector.load %arg6[%c0_15, %c0_16, %c0_17] : memref<1x16x128xf32, #tpu.memory_space<vmem>>, vector<1x16x128xf32>
    %101 = vector.shape_cast %100 : vector<1x16x128xf32> to vector<16x128xf32>
    %102 = vector.shape_cast %99 : vector<16x128xf32> to vector<1x16x128xf32>
    tpu.vector_store %arg6[%c0_15, %c0_16, %c0_17], %102 {strides = array<i32>} : memref<1x16x128xf32, #tpu.memory_space<vmem>>, vector<1x16x128xf32>,
    return
  }
  func.func @transform_0(%arg0: i32) -> (i32, i32, i32) {
    %c0_i32 = arith.constant 0 : i32
    %c0_i32_0 = arith.constant 0 : i32
    %c0_i32_1 = arith.constant 0 : i32
    return %arg0, %c0_i32, %c0_i32_0 : i32, i32, i32
  }
  func.func @transform_1(%arg0: i32) -> (i32, i32) {
    %c0_i32 = arith.constant 0 : i32
    %c0_i32_0 = arith.constant 0 : i32
    %c0_i32_1 = arith.constant 0 : i32
    return %c0_i32, %c0_i32_0 : i32, i32
  }
  func.func @transform_2(%arg0: i32) -> (i32, i32) {
    %c0_i32 = arith.constant 0 : i32
    %c0_i32_0 = arith.constant 0 : i32
    %c0_i32_1 = arith.constant 0 : i32
    return %c0_i32, %c0_i32_0 : i32, i32
  }
  func.func @transform_3(%arg0: i32) -> (i32, i32) {
    %c0_i32 = arith.constant 0 : i32
    %c0_i32_0 = arith.constant 0 : i32
    %c0_i32_1 = arith.constant 0 : i32
    return %c0_i32, %c0_i32_0 : i32, i32
  }
  func.func @transform_4(%arg0: i32) -> (i32, i32) {
    %c0_i32 = arith.constant 0 : i32
    %c0_i32_0 = arith.constant 0 : i32
    %c0_i32_1 = arith.constant 0 : i32
    return %c0_i32, %c0_i32_0 : i32, i32
  }
  func.func @transform_5(%arg0: i32) -> (i32, i32, i32) {
    %c0_i32 = arith.constant 0 : i32
    %c0_i32_0 = arith.constant 0 : i32
    %c0_i32_1 = arith.constant 0 : i32
    return %arg0, %c0_i32, %c0_i32_0 : i32, i32, i32
  }
}

</mosaic_0001>

<bundles_post_ra>
// kernel: tpu_custom_call.1
= control target key start
LH: loop header
LB: loop body
LE: loop exit
PB: predicated region body
PF: predicated region fallthrough
CT: control target
= control target key end

     0   :  { %10 = vsyncpa [#allocation3], 0  ;;  %s3042_s0 = inlined_call_operand.hbm [shape: bf16[2,16,128], index: 0, kind: input, shape index: {}]   ;;  %s3043_s1 = inlined_call_operand.hbm [shape: bf16[128,384], index: 1, kind: input, shape index: {}]   ;;  %s3044_s2 = inlined_call_operand.vmem [shape: f32[1,384], index: 2, kind: input, shape index: {}]   ;;  %s3045_s3 = inlined_call_operand.hbm [shape: bf16[128,128], index: 3, kind: input, shape index: {}]   ;;  %s3046_s4 = inlined_call_operand.vmem [shape: f32[1,128], index: 4, kind: input, shape index: {}]   ;;  %s3047_s5 = inlined_call_operand.hbm [shape: f32[2,16,128], index: 5, kind: output, shape index: {}]  }
   0x1   :  { %12 = vsyncpa [#allocation3 + $0x1], 0 }
   0x2   :  { %13 = vsyncpa [#allocation6], 0 }
   0x3   :  { %14 = vsyncpa [#allocation4], 0 }
   0x4   :  { %16 = vsyncpa [#allocation4 + $0x1], 0  ;;  %s2494_s18 = smov 0   ;;  %s2496_s19 = smov 0  }
   0x5   :  { %s2498_s20 = smov 0   ;;  %s2500_s21 = smov 0  }
   0x6 LB: > { %s2515_s22 = sadd.s32 4294967295, %s2442_s21   ;;  %s1807_s23 = sadd.s32 4294967294, %s2442_s21   ;;  %s2442_s21 = sphi %s2500_s21, %s3067_s21   ;;  %s2438_s20 = sphi %s2498_s20, %s3066_s20   ;;  %s2434_s19 = sphi %s2496_s19, %s3065_s19   ;;  %s2430_s18 = sphi %s2494_s18, %s3064_s18  }
   0x7   : > { %p42_p0 = scmp.ne.s32.totalorder %s2434_s19, %s2430_s18  ;;  %p3048_p1 = scmp.eq.s32.totalorder %s2515_s22, 0 }
   0x8   : > { %p156_p3 = scmp.eq.s32.totalorder %s1807_s23, 1  ;;  %p1808_p5 = scmp.ge.s32.totalorder %s2442_s21, 1 }
   0x9   : > { %p2524_p4 = por %p3048_p1, %p42_p0  ;;  %p163_p7 = scmp.lt.s32.totalorder %s2442_s21, 3 }
   0xa   : > { %p2529_p6 = por %p156_p3, %p42_p0  ;;  %s2444_s27 = smov [#allocation5]  }
   0xb   : > { %s3051_s24 = scalar_select %p2524_p4, 1, 0 }
   0xc   : > { %s3052_s25 = scalar_select %p2529_p6, 1, 0 }
   0xd   : > { %p2534_p8 = pnand %p1808_p5, %p163_p7  ;;  %s175_s28 = sshll.u32 %s2444_s27, 4  ;;  %s2538_s28 = int_to_ptr.vmem [resolvable:$true] %s175_s28 }
   0xe   : > { %s2445_s30 = smov [#allocation7]   ;;  %s2286_s9 = scalar_lea.hbm %s3043_s1, 3072 }
   0xf   : > { %p2075_p9 = pneg %p2534_p8  ;;  %s191_s6 = sshll.u32 %s2445_s30, 4  ;;  %s2549_s6 = int_to_ptr.vmem [resolvable:$true] %s191_s6 }
  0x10   : > { %p2287_p12 = scmp.ne.s32.totalorder %s3043_s1, %s2286_s9  ;;  %p2293_p5 = scmp.lt.u32.totalorder %s2286_s9, %s3043_s1 }
  0x11   : > { %p2545_p11 = pnand %p2075_p9, %p3048_p1 }
  0x13   : > { %p2288_p13 = pneg %p2545_p11 }
  0x15   : > { %p2289_p0 = pnand %p2288_p13, %p2287_p12 }
  0x17   : > { %p2290_p3 = pneg %p2289_p0 }
  0x19   : > { %p2295_p7 = pnand %p2293_p5, %p2290_p3 }
  0x1b   : > { %2298 = shalt.err (!%p2295_p7)
}
  0x1c   : > { %s2299_s14 = scalar_lea.vmem %s2538_s28, 3072  ;;  %p2307_p2 = scmp.lt.s32.totalorder %s2538_s28, %s2538_s28 }
  0x1d   : > { %p2300_p9 = scmp.ne.s32.totalorder %s2538_s28, %s2299_s14  ;;  %p2308_p12 = scmp.lt.s32.totalorder %s2299_s14, %s2299_s14 }
  0x1f   : > { %p2302_p10 = pnand %p2300_p9, %p2288_p13  ;;  %p2309_p0 = por %p2308_p12, %p2307_p2 }
  0x21   : > { %p2303_p1 = pneg %p2302_p10 }
  0x23   : > { %p2310_p6 = pnand %p2309_p0, %p2303_p1 }
  0x25   : > { %2313 = shalt.err (!%p2310_p6)
}
  0x26   : > { %s2446_s15 = smov 192   ;;  %s2447_s16 = smov 12  }
  0x27   : > { %2078 = dma.hbm_to_vmem [thread:$0]  (!%p2545_p11), %s3043_s1, 3072, %s2538_s28, [#allocation6], %s2446_s15, %s2446_s15, %s2447_s16  }
  0x28   : > { %s2314_s7 = scalar_lea.hbm %s3045_s3, 1024 }
  0x29   : > { %p2315_p2 = scmp.ne.s32.totalorder %s3045_s3, %s2314_s7  ;;  %p2321_p10 = scmp.lt.u32.totalorder %s2314_s7, %s3045_s3 }
  0x2b   : > { %p2317_p1 = pnand %p2315_p2, %p2288_p13 }
  0x2d   : > { %p2318_p6 = pneg %p2317_p1 }
  0x2f   : > { %p2323_p3 = pnand %p2321_p10, %p2318_p6 }
  0x31   : > { %2326 = shalt.err (!%p2323_p3)
}
  0x32   : > { %s2327_s28 = scalar_lea.vmem %s2549_s6, 1024  ;;  %p2335_p12 = scmp.lt.s32.totalorder %s2549_s6, %s2549_s6 }
  0x33   : > { %p2328_p5 = scmp.ne.s32.totalorder %s2549_s6, %s2327_s28  ;;  %p2336_p0 = scmp.lt.s32.totalorder %s2327_s28, %s2327_s28 }
  0x35   : > { %p2330_p7 = pnand %p2328_p5, %p2288_p13  ;;  %p2337_p2 = por %p2336_p0, %p2335_p12 }
  0x37   : > { %p2331_p9 = pneg %p2330_p7 }
  0x39   : > { %p2338_p1 = pnand %p2337_p2, %p2331_p9 }
  0x3b   : > { %2341 = shalt.err (!%p2338_p1)
}
  0x3c   : > { %s2448_s12 = smov 64   ;;  %s2449_s13 = smov 4  }
  0x3d   : > { %2081 = dma.hbm_to_vmem [thread:$0]  (!%p2545_p11), %s3045_s3, 1024, %s2549_s6, [#allocation6], %s2448_s12, %s2448_s12, %s2449_s13  }
  0x3e   : > { %s2607_s16 = sadd.s32 1, %s2442_s21   ;;  %s29_s23 = sadd.s32 1, %s2438_s20 }
  0x3f   : > { %s26_s17 = ssub.s32 %s2442_s21, %s2607_s16  ;;  %p36_p6 = scmp.ne.s32.totalorder %s2438_s20, %s2434_s19 }
  0x40   : > { %p27_p13 = scmp.eq.s32.totalorder %s26_s17, 0  ;;  %p37_p10 = scmp.eq.s32.totalorder %s2442_s21, 0 }
  0x41   : > { %p3055_p5 = scmp.eq.s32.totalorder %s2515_s22, 1  ;;  %p2092_p9 = scmp.lt.s32.totalorder %s2442_s21, 2 }
  0x42   : > { %s2616_s27 = scalar_select %p27_p13, %s2438_s20, %s29_s23  }
  0x43   : > { %p38_p3 = por %p37_p10, %p36_p6  ;;  %p2620_p7 = por %p3055_p5, %p36_p6 }
  0x44   : > { %s208_s30 = sand.u32 1, %s2438_s20   ;;  %s1875_s6 = sshll.u32 %s2442_s21, 7 }
  0x45   : > { %s3056_s29 = scalar_select %p2620_p7, 1, 0 }
  0x46   : > { %s1812_s7 = sshll.u32 %s208_s30, 3  ;;  %s2630_s10 = scalar_lea.hbm %s3042_s0, %s1875_s6 }
  0x47   : > { %s212_s11 = scalar_lea.vmem [#allocation2], %s1812_s7  ;;  %p2634_p11 = pnand %p2092_p9, %p38_p3 }
  0x48   : > { %s219_s28 = sshll.u32 %s212_s11, 4  ;;  %s2638_s15 = scalar_lea.sflag [#allocation3], %s208_s30  ;;  %s2632_s28 = int_to_ptr.vmem [resolvable:$true] %s219_s28 }
  0x49   : > { %s2342_s17 = scalar_lea.hbm %s2630_s10, 128  ;;  %p2344_p0 = pneg %p2634_p11 }
  0x4a   : > { %p2343_p12 = scmp.ne.s32.totalorder %s2630_s10, %s2342_s17  ;;  %s2347_s6 = scalar_lea.hbm %s3042_s0, 256 }
  0x4b   : > { %p2348_p13 = scmp.lt.u32.totalorder %s2630_s10, %s3042_s0  ;;  %p2349_p6 = scmp.lt.u32.totalorder %s2347_s6, %s2342_s17 }
  0x4c   : > { %p2345_p2 = pnand %p2344_p0, %p2343_p12  ;;  %p2351_p3 = scmp.lt.u32.totalorder %s2342_s17, %s2630_s10 }
  0x4d   : > { %p2350_p10 = por %p2349_p6, %p2348_p13 }
  0x4e   : > { %p2346_p1 = pneg %p2345_p2 }
  0x4f   : > { %p2352_p5 = por %p2351_p3, %p2350_p10 }
  0x51   : > { %p2353_p9 = pnand %p2352_p5, %p2346_p1 }
  0x53   : > { %2356 = shalt.err (!%p2353_p9)
}
  0x54   : > { %s2357_s30 = scalar_lea.vmem %s2632_s28, 128  ;;  %s2450_s11 = smov [#allocation2]  }
  0x55   : > { %p2358_p12 = scmp.ne.s32.totalorder %s2632_s28, %s2357_s30  ;;  %s2362_s23 = sshll.u32 %s2450_s11, 4  ;;  %s2363_s23 = int_to_ptr.vmem [resolvable:$false] %s2362_s23 }
  0x56   : > { %s2364_s7 = scalar_lea.vmem %s2363_s23, 256  ;;  %p2365_p4 = scmp.lt.s32.totalorder %s2632_s28, %s2363_s23 }
  0x57   : > { %p2360_p2 = pnand %p2358_p12, %p2344_p0  ;;  %p2366_p13 = scmp.lt.s32.totalorder %s2364_s7, %s2357_s30 }
  0x59   : > { %p2361_p7 = pneg %p2360_p2  ;;  %p2367_p6 = por %p2366_p13, %p2365_p4 }
  0x5b   : > { %p2368_p10 = pnand %p2367_p6, %p2361_p7 }
  0x5d   : > { %2371 = shalt.err (!%p2368_p10)
}
  0x5e   : > { %2085 = dma.hbm_to_vmem [thread:$0]  (!%p2634_p11), %s2630_s10, 128, %s2632_s28, %s2638_s15, %s2448_s12, %s2448_s12, %s2449_s13  }
  0x5f   : > { %231 = sbr.rel (%p2534_p8) target bundleno = 1660 (0x67c), region = 40  ;;  %s2672_s17 = sand.u32 (!%p2534_p8), 1, %s2434_s19  }
  0x60   : > { %s1816_s6 = sshll.u32 (!%p2534_p8), %s2672_s17, 3  ;;  %s234_s8 = scalar_lea.sflag (!%p2534_p8), [#allocation3], %s2672_s17 }
  0x61   : > { %s2676_s9 = scalar_lea.vmem (!%p2534_p8), [#allocation2], %s1816_s6  ;;  %p3058_p4 = scmp.ne.s32.totalorder (!%p2534_p8), %s3051_s24, 0 }
  0x66   : > { %2417 = dma.done.wait (%p3058_p4), %s234_s8, 128  }
  0x67   : > { %2419 = vsyncadd (%p3058_p4), %s234_s8, 4294967168  ;;  %p3059_p7 = scmp.eq.s32.totalorder %s2515_s22, 0 }
  0x69   : > { %2421 = dma.done.wait (%p3059_p7), [#allocation6], 4096   ;;  %p3060_p8 = pmov %p3059_p7 }
  0x6a   : > { %v2451_v0 = vmov 0   ;;  %v2452_v1 = vmov 0.0   ;;  %vm2453_vm0 = vmmov 0   ;;  %v2181_v2 = vld [vmem:[#allocation5 + $0x4] ss:$12 sps:$4 sm:$0xff]   ;;  %v309_v27 = vlaneseq  ;;  %s2454_s12 = smov 96  }
  0x6b   : > { %2423 = vsyncadd (%p3060_p8), [#allocation6], 4294963200  ;;  %490 = vmatprep.mubr.bf16.mxu0 %v2451_v0  ;;  %1927 = vmatprep.subr.bf16.mxu1 %v2452_v1  ;;  %v2183_v3 = vld [vmem:[#allocation5] ss:$12 sps:$4 sm:$0xff]   ;;  %v2184_v4 = vld [vmem:[#allocation5 + $0x1c] ss:$12 sps:$4 sm:$0xff]  }
  0x6c   : > { %1943 = vmatprep.mubr.msk.bf16.mxu1 %vm2453_vm0, %v2452_v1  ;;  %458 = vmatprep.subr.bf16.mxu0 %v2181_v2  ;;  %v2186_v5 = vld [vmem:[#allocation5 + $0x18] ss:$12 sps:$4 sm:$0xff]   ;;  %v2187_v6 = vld [vmem:[#allocation5 + $0x34] ss:$12 sps:$4 sm:$0xff]   ;;  %v2189_v7 = vld [vmem:[#allocation5 + $0x30] ss:$12 sps:$4 sm:$0xff]  }
  0x6d   : > { %459 = vmatpush1.bf16.msra.mxu0 %v2183_v3  ;;  %v2190_v8 = vld [vmem:[#allocation5 + $0x4c] ss:$12 sps:$4 sm:$0xff]   ;;  %v2192_v9 = vld [vmem:[#allocation5 + $0x48] ss:$12 sps:$4 sm:$0xff]   ;;  %v2193_v10 = vld [vmem:[#allocation5 + $0x64] ss:$12 sps:$4 sm:$0xff]  }
  0x6e   : > { %460 = vmatprep.subr.bf16.mxu0 %v2184_v4  ;;  %v2206_v11 = vld [vmem:[#allocation5 + $0x8] ss:$12 sps:$4 sm:$0xff]   ;;  %v2207_v12 = vld [vmem:[#allocation5 + $0x20] ss:$12 sps:$4 sm:$0xff]   ;;  %v2208_v15 = vld [vmem:[#allocation5 + $0x38] ss:$12 sps:$4 sm:$0xff]  }
  0x6f   : > { %1928 = vmatpush3.bf16.msra.mxu1 %v2206_v11  ;;  %v2195_v13 = vld [vmem:[#allocation5 + $0x60] ss:$12 sps:$4 sm:$0xff]   ;;  %v2196_v14 = vld [vmem:[#allocation5 + $0x7c] ss:$12 sps:$4 sm:$0xff]   ;;  %v2198_v16 = vld [vmem:[#allocation5 + $0x78] ss:$12 sps:$4 sm:$0xff]  }
  0x70   : > { %1929 = vmatprep.subr.bf16.mxu1 %v2452_v1  ;;  %v2199_v17 = vld [vmem:[#allocation5 + $0x94] ss:$12 sps:$4 sm:$0xff]   ;;  %v2209_v18 = vld [vmem:[#allocation5 + $0x50] ss:$12 sps:$4 sm:$0xff]   ;;  %v2202_v20 = vld [vmem:[#allocation5 + $0xac] ss:$12 sps:$4 sm:$0xff]  }
  0x71   : > { %461 = vmatpush1.bf16.msra.mxu0 %v2186_v5  ;;  %v2201_v19 = vld [vmem:[#allocation5 + $0x90] ss:$12 sps:$4 sm:$0xff]   ;;  %v2210_v21 = vld [vmem:[#allocation5 + $0x68] ss:$12 sps:$4 sm:$0xff]   ;;  %v2211_v24 = vld [vmem:[#allocation5 + $0x80] ss:$12 sps:$4 sm:$0xff]  }
  0x72   : > { %462 = vmatprep.subr.bf16.mxu0 %v2187_v6  ;;  %v2204_v22 = vld [vmem:[#allocation5 + $0xa8] ss:$12 sps:$4 sm:$0xff]   ;;  %v2212_v25 = vld [vmem:[#allocation5 + $0x98] ss:$12 sps:$4 sm:$0xff]   ;;  %v2213_v26 = vld [vmem:[#allocation5 + $0xb0] ss:$12 sps:$4 sm:$0xff]  }
  0x73   : > { %1930 = vmatpush3.bf16.msra.mxu1 %v2207_v12  ;;  %v2205_v23 = vld [vmem:[%s2676_s9] sm:$0xff]   ;;  %v310_v28 = vshrl.u32 %v309_v27, 7  ;;  %vm597_vm1 = vcmask 130048   ;;  %s2455_s13 = smov 112   ;;  %s2456_s10 = smov 64   ;;  %vm1568_vm2 = vcmask 261120  }
  0x74   : > { %1931 = vmatprep.subr.bf16.mxu1 %v2452_v1  ;;  %v307_v30 = vld [vmem:[%s3044_s2] sm:$0x7]  ;;  %s2457_s28 = smov 80   ;;  %s2458_s14 = smov 48   ;;  %vm1571_vm3 = vcmask 392192   ;;  %vm1574_vm4 = vcmask 523264  }
  0x75   : > { %463 = vmatpush1.bf16.msra.mxu0 %v2189_v7  ;;  %v311_v29 = vsub.s32 0, %v310_v28  ;;  %v315_v31 = vsub.s32 1, %v310_v28  ;;  %s2459_s15 = smov 32   ;;  %s2460_s30 = smov 16   ;;  %v319_v45 = vsub.s32 2, %v310_v28  ;;  %vm1577_vm5 = vcmask 654336  }
  0x76   : > { %464 = vmatprep.subr.bf16.mxu0 %v2190_v8  ;;  %vm1580_vm6 = vcmask 785408   ;;  %vm1583_vm7 = vcmask 916480   ;;  %s1819_s11 = sshll.u32 %s2672_s17, 4  ;;  %s1876_s9 = sshll.u32 %s2515_s22, 8 }
  0x77   : > { %1932 = vmatpush3.bf16.msra.mxu1 %v2208_v15  ;;  %v312_v32 = vrot.slane %v307_v30, %v311_v29  ;;  %v316_v34 = vrot.slane %v307_v30, %v315_v31  ;;  %v320_v48 = vrot.slane %v307_v30, %v319_v45  ;;  %s271_s6 = scalar_lea.vmem [#allocation8], %s1819_s11  ;;  %p3061_p0 = scmp.ne.s32.totalorder %s3056_s29, 0 }
  0x78   : > { %1933 = vmatprep.subr.bf16.mxu1 %v2452_v1  ;;  %s1715_s8 = sshll.u32 %s271_s6, 4  ;;  %s2993_s8 = int_to_ptr.vmem [resolvable:$true] %s1715_s8 }
  0x79   : > { %465 = vmatpush1.bf16.msra.mxu0 %v2192_v9  ;;  %s2372_s22 = scalar_lea.vmem %s2993_s8, 256 }
  0x7a   : > { %466 = vmatprep.subr.bf16.mxu0 %v2193_v10  ;;  %p2373_p11 = scmp.ne.s32.totalorder %s2993_s8, %s2372_s22 }
  0x7b   : > { %1934 = vmatpush3.bf16.msra.mxu1 %v2209_v18 }
  0x7c   : > { %1935 = vmatprep.subr.bf16.mxu1 %v2452_v1  ;;  %p2374_p1 = pnand %p2373_p11, %p3061_p0 }
  0x7d   : > { %467 = vmatpush1.bf16.msra.mxu0 %v2195_v13 }
  0x7e   : > { %468 = vmatprep.subr.bf16.mxu0 %v2196_v14  ;;  %p2375_p3 = pneg %p2374_p1 }
  0x7f   : > { %1936 = vmatpush3.bf16.msra.mxu1 %v2210_v21 }
  0x80   : > { %1937 = vmatprep.subr.bf16.mxu1 %v2452_v1 }
  0x81   : > { %469 = vmatpush1.bf16.msra.mxu0 %v2198_v16 }
  0x82   : > { %470 = vmatprep.subr.bf16.mxu0 %v2199_v17 }
  0x83   : > { %1938 = vmatpush3.bf16.msra.mxu1 %v2211_v24 }
  0x84   : > { %1939 = vmatprep.subr.bf16.mxu1 %v2452_v1 }
  0x85   : > { %471 = vmatpush1.bf16.msra.mxu0 %v2201_v19 }
  0x86   : > { %472 = vmatprep.subr.bf16.mxu0 %v2202_v20 }
  0x87   : > { %1940 = vmatpush3.bf16.msra.mxu1 %v2212_v25 }
  0x88   : > { %1941 = vmatprep.subr.bf16.mxu1 %v2452_v1 }
  0x89   : > { %473 = vmatpush1.bf16.msra.mxu0 %v2204_v22 }
  0x8a   : > { %1971 = vmatprep.subr.bf16.mxu0 %v2452_v1 }
  0x8b   : > { %1942 = vmatpush3.bf16.msra.mxu1 %v2213_v26 }
  0x8c   : > { %491 = vmatmul.mubr.bf16.vlgmr.msra.gmra.mrb[0].mxu0 %v2205_v23  ;;  %1947 = vmatprep.subr.bf16.mxu1 %v2452_v1 }
  0x8d   : > { %1973 = vmatprep.mubr.msk.bf16.mxu0 %vm2453_vm0, %v2452_v1 }
  0x8e   : > { %1944 = vmatmul.mubr.bf16.vlgmr.msra.gmra.mrb[0].mxu1 %v2205_v23 }
  0x8f   : > { %1949 = vmatprep.mubr.msk.bf16.mxu1 %vm2453_vm0, %v2452_v1 }
 0x15f   : > { %v492_v33 = vpop.f32.mrb[0].mxu0 }
 0x160   : > { %v494_v35 = vpop.f32.mrb[1].mxu0  ;;  %v493_v37 = vadd.f32 %v492_v33, %v312_v32 }
 0x161   : > { %v496_v36 = vpop.f32.mrb[2].mxu0  ;;  %v495_v40 = vadd.f32 %v494_v35, %v316_v34  ;;  %v535_v46 = vpop.f32.mrb[0].mxu1 }
 0x162   : > { %v497_v38 = vadd.f32 %v496_v36, %v312_v32  ;;  %v498_v39 = vpop.f32.mrb[3].mxu0  ;;  %v1945_v47 = vpop.f32.mrb[1].mxu1  ;;  %v536_v51 = vadd.f32 %v535_v46, %v320_v48 }
 0x163   : > { %v499_v41 = vadd.f32 %v498_v39, %v316_v34  ;;  %v538_v49 = vpop.f32.mrb[2].mxu1 }
 0x164   : > { %v542_v42 = vpack.c.bf16 %v497_v38, %v493_v37  ;;  %v1946_v50 = vpop.f32.mrb[3].mxu1  ;;  %v539_v52 = vadd.f32 %v538_v49, %v320_v48 }
 0x165   : > { %v543_v43 = vpack.c.bf16 %v499_v41, %v495_v40 }
 0x166   : > { %v2725_v53 = vpack.c.bf16 %v539_v52, %v536_v51 }
 0x167   : > { %563 = vrot.lane.b32.xlu1 %v543_v43, %s2454_s12  ;;  %561 = vrot.lane.b32.xlu0 %v543_v43, %s2455_s13  ;;  %v602_v44 = vsel %vm597_vm1, %v543_v43, 0 }
 0x168   : > { %1948 = vmatpush3.bf16.xpose.msra.mxu1 %v602_v44 }
 0x169   : > { %1953 = vmatprep.subr.bf16.mxu1 %v2452_v1 }
 0x16b   : > { %548 = vrot.lane.b32.xlu1 %v542_v42, %s2454_s12  ;;  %546 = vrot.lane.b32.xlu0 %v542_v42, %s2455_s13 }
 0x16f   : > { %567 = vrot.lane.b32.xlu1 %v543_v43, %s2456_s10  ;;  %565 = vrot.lane.b32.xlu0 %v543_v43, %s2457_s28 }
 0x170   : > { %1950 = vmatmul.mubr.msk.bf16.vlgmr.msra.gmra.mrb[4].mxu1 %vm597_vm1, %v542_v42 }
 0x171   : > { %1955 = vmatprep.mubr.msk.bf16.mxu1 %vm2453_vm0, %v2452_v1 }
 0x173   : > { %569 = vrot.lane.b32.xlu1 %v543_v43, %s2458_s14  ;;  %550 = vrot.lane.b32.xlu0 %v542_v42, %s2457_s28 }
 0x177   : > { %571 = vrot.lane.b32.xlu1 %v543_v43, %s2459_s15  ;;  %552 = vrot.lane.b32.xlu0 %v542_v42, %s2456_s10 }
 0x17b   : > { %573 = vrot.lane.b32.xlu1 %v543_v43, %s2460_s30  ;;  %554 = vrot.lane.b32.xlu0 %v542_v42, %s2458_s14 }
 0x17f   : > { %558 = vrot.lane.b32.xlu1 %v542_v42, %s2460_s30  ;;  %556 = vrot.lane.b32.xlu0 %v542_v42, %s2459_s15 }
 0x183   : > { %576 = vrot.lane.b32.xlu1 %v2725_v53, %s2455_s13 }
 0x1d9   : > { %v564_v54 = vpop.permute.xlu1 %563  ;;  %v562_v55 = vpop.permute.xlu0 %561 }
 0x1da   : > { %v649_v56 = vsel %vm597_vm1, %v562_v55, 0  ;;  %v696_v61 = vsel %vm597_vm1, %v564_v54, 0 }
 0x1db   : > { %1954 = vmatpush3.bf16.xpose.msra.mxu1 %v649_v56 }
 0x1dc   : > { %1959 = vmatprep.subr.bf16.mxu1 %v2452_v1 }
 0x1dd   : > { %v549_v57 = vpop.permute.xlu1 %548  ;;  %v547_v58 = vpop.permute.xlu0 %546 }
 0x1e1   : > { %v568_v59 = vpop.permute.xlu1 %567  ;;  %v566_v60 = vpop.permute.xlu0 %565 }
 0x1e2   : > { %v790_v62 = vsel %vm597_vm1, %v568_v59, 0  ;;  %1956 = vmatmul.mubr.msk.bf16.vlgmr.msra.gmra.mrb[8].mxu1 %vm597_vm1, %v547_v58  ;;  %v743_v4 = vsel %vm597_vm1, %v566_v60, 0 }
 0x1e3   : > { %1960 = vmatpush3.bf16.xpose.msra.mxu1 %v696_v61  ;;  %1972 = vmatpush3.bf16.xpose.msra.mxu0 %v790_v62 }
 0x1e4   : > { %1961 = vmatprep.mubr.msk.bf16.mxu1 %vm2453_vm0, %v2452_v1  ;;  %1965 = vmatprep.subr.bf16.mxu1 %v2452_v1 }
 0x1e5   : > { %v570_v63 = vpop.permute.xlu1 %569  ;;  %v551_v0 = vpop.permute.xlu0 %550  ;;  %1983 = vmatprep.subr.bf16.mxu0 %v2452_v1 }
 0x1e6   : > { %v837_v8 = vsel %vm597_vm1, %v570_v63, 0 }
 0x1e9   : > { %v572_v2 = vpop.permute.xlu1 %571  ;;  %v553_v3 = vpop.permute.xlu0 %552 }
 0x1ea   : > { %v884_v5 = vsel %vm597_vm1, %v572_v2, 0  ;;  %1962 = vmatmul.mubr.msk.bf16.vlgmr.msra.gmra.mrb[12].mxu1 %vm597_vm1, %v549_v57  ;;  %1974 = vmatmul.mubr.msk.bf16.vlgmr.msra.gmra.mrb[4].mxu0 %vm597_vm1, %v553_v3 }
 0x1eb   : > { %1966 = vmatpush3.bf16.xpose.msra.mxu1 %v743_v4  ;;  %1984 = vmatpush3.bf16.xpose.msra.mxu0 %v884_v5 }
 0x1ec   : > { %1985 = vmatprep.mubr.msk.bf16.mxu0 %vm2453_vm0, %v2452_v1  ;;  %1967 = vmatprep.mubr.msk.bf16.mxu1 %vm2453_vm0, %v2452_v1 }
 0x1ed   : > { %v555_v6 = vpop.permute.xlu0 %554  ;;  %1977 = vmatprep.subr.bf16.mxu1 %v2452_v1  ;;  %1995 = vmatprep.subr.bf16.mxu0 %v2452_v1  ;;  %v574_v9 = vpop.permute.xlu1 %573 }
 0x1ee   : > { %v931_v10 = vsel %vm597_vm1, %v574_v9, 0 }
 0x1f1   : > { %v557_v7 = vpop.permute.xlu0 %556  ;;  %v559_v11 = vpop.permute.xlu1 %558 }
 0x1f2   : > { %1968 = vmatmul.mubr.msk.bf16.vlgmr.msra.gmra.mrb[16].mxu1 %vm597_vm1, %v551_v0  ;;  %1986 = vmatmul.mubr.msk.bf16.vlgmr.msra.gmra.mrb[8].mxu0 %vm597_vm1, %v557_v7 }
 0x1f3   : > { %1978 = vmatpush3.bf16.xpose.msra.mxu1 %v837_v8  ;;  %1979 = vmatprep.mubr.msk.bf16.mxu1 %vm2453_vm0, %v2452_v1 }
 0x1f4   : > { %1989 = vmatprep.subr.bf16.mxu1 %v2452_v1  ;;  %1996 = vmatpush3.bf16.msra.mxu0 %v2725_v53 }
 0x1f5   : > { %1997 = vmatprep.mubr.msk.bf16.mxu0 %vm2453_vm0, %v2452_v1  ;;  %2007 = vmatprep.subr.bf16.mxu0 %v2452_v1  ;;  %v577_v18 = vpop.permute.xlu1 %576 }
 0x1fa   : > { %1980 = vmatmul.mubr.msk.bf16.vlgmr.msra.gmra.mrb[20].mxu1 %vm597_vm1, %v555_v6 }
 0x1fb   : > { %1990 = vmatpush3.bf16.xpose.msra.mxu1 %v931_v10  ;;  %1991 = vmatprep.mubr.msk.bf16.mxu1 %vm2453_vm0, %v2452_v1 }
 0x1fc   : > { %2001 = vmatprep.subr.bf16.mxu1 %v2452_v1 }
 0x202   : > { %1992 = vmatmul.mubr.msk.bf16.vlgmr.msra.gmra.mrb[24].mxu1 %vm597_vm1, %v559_v11 }
 0x203   : > { %2003 = vmatprep.mubr.msk.bf16.mxu1 %vm2453_vm0, %v2452_v1  ;;  %2002 = vmatpush3.bf16.msra.mxu1 %v577_v18 }
 0x204   : > { %2013 = vmatprep.subr.bf16.mxu1 %v2452_v1 }
 0x243   : > { %v2766_v12 = vpop.f32.mrb[4].mxu1 }
 0x244   : > { %v1951_v13 = vpop.f32.mrb[5].mxu1  ;;  %v974_v14 = vsel %vm597_vm1, %v2766_v12, -inf }
 0x245   : > { %975 = vmax.xlane.f32.xlu0 %v974_v14  ;;  %v2770_v15 = vpop.f32.mrb[6].mxu1 }
 0x246   : > { %v1952_v16 = vpop.f32.mrb[7].mxu1  ;;  %v977_v17 = vsel %vm597_vm1, %v2770_v15, -inf }
 0x247   : > { %978 = vmax.xlane.f32.xlu1 %v977_v17 }
 0x2b5   : > { %v2775_v19 = vpop.f32.mrb[8].mxu1 }
 0x2b6   : > { %v1957_v20 = vpop.f32.mrb[9].mxu1  ;;  %v980_v21 = vsel %vm597_vm1, %v2775_v19, -inf }
 0x2b7   : > { %981 = vmax.xlane.f32.xlu0 %v980_v21  ;;  %v2779_v22 = vpop.f32.mrb[10].mxu1 }
 0x2b8   : > { %v1958_v23 = vpop.f32.mrb[11].mxu1  ;;  %v983_v24 = vsel %vm597_vm1, %v2779_v22, -inf }
 0x2bb   : > { %984 = vmax.xlane.f32.xlu0 %v983_v24 }
 0x2bd   : > { %v2783_v25 = vpop.f32.mrb[12].mxu1  ;;  %v2785_v26 = vpop.f32.mrb[4].mxu0 }
 0x2be   : > { %v1963_v27 = vpop.f32.mrb[13].mxu1  ;;  %v1975_v28 = vpop.f32.mrb[5].mxu0  ;;  %v998_v29 = vsel %vm597_vm1, %v2785_v26, -inf  ;;  %v986_v35 = vsel %vm597_vm1, %v2783_v25, -inf }
 0x2bf   : > { %v2789_v30 = vpop.f32.mrb[6].mxu0  ;;  %999 = vmax.xlane.f32.xlu1 %v998_v29  ;;  %v2791_v31 = vpop.f32.mrb[14].mxu1 }
 0x2c0   : > { %v1964_v32 = vpop.f32.mrb[15].mxu1  ;;  %v1976_v33 = vpop.f32.mrb[7].mxu0  ;;  %v1001_v34 = vsel %vm597_vm1, %v2789_v30, -inf  ;;  %v989_v36 = vsel %vm597_vm1, %v2791_v31, -inf }
 0x2c1   : > { %1002 = vmax.xlane.f32.xlu0 %v1001_v34 }
 0x2c3   : > { %987 = vmax.xlane.f32.xlu1 %v986_v35 }
 0x2c5   : > { %v2799_v37 = vpop.f32.mrb[8].mxu0  ;;  %990 = vmax.xlane.f32.xlu0 %v989_v36  ;;  %v2801_v38 = vpop.f32.mrb[16].mxu1 }
 0x2c6   : > { %v1969_v39 = vpop.f32.mrb[17].mxu1  ;;  %v1987_v40 = vpop.f32.mrb[9].mxu0  ;;  %v1010_v41 = vsel %vm597_vm1, %v2799_v37, -inf  ;;  %v992_v47 = vsel %vm597_vm1, %v2801_v38, -inf }
 0x2c7   : > { %v2805_v42 = vpop.f32.mrb[10].mxu0  ;;  %1011 = vmax.xlane.f32.xlu1 %v1010_v41  ;;  %v2807_v43 = vpop.f32.mrb[18].mxu1 }
 0x2c8   : > { %v1970_v44 = vpop.f32.mrb[19].mxu1  ;;  %v1988_v45 = vpop.f32.mrb[11].mxu0  ;;  %v1013_v46 = vsel %vm597_vm1, %v2805_v42, -inf  ;;  %v995_v48 = vsel %vm597_vm1, %v2807_v43, -inf }
 0x2c9   : > { %1014 = vmax.xlane.f32.xlu0 %v1013_v46 }
 0x2cb   : > { %993 = vmax.xlane.f32.xlu1 %v992_v47 }
 0x2cd   : > { %996 = vmax.xlane.f32.xlu0 %v995_v48  ;;  %v2815_v49 = vpop.f32.mrb[20].mxu1 }
 0x2ce   : > { %v1981_v50 = vpop.f32.mrb[21].mxu1  ;;  %v1004_v51 = vsel %vm597_vm1, %v2815_v49, -inf }
 0x2cf   : > { %1005 = vmax.xlane.f32.xlu1 %v1004_v51  ;;  %v2819_v52 = vpop.f32.mrb[22].mxu1 }
 0x2d0   : > { %v1982_v54 = vpop.f32.mrb[23].mxu1  ;;  %v1007_v55 = vsel %vm597_vm1, %v2819_v52, -inf }
 0x2d1   : > { %1008 = vmax.xlane.f32.xlu0 %v1007_v55 }
 0x2d2   : > { %v976_v63 = vpop.xlane.xlu0 %975 }
 0x2d3   : > { %v1022_v2 = vsub.f32 %v2766_v12, %v976_v63 }
 0x2d4   : > { %v979_v62 = vpop.xlane.xlu1 %978 }
 0x2d5   : > { %v2823_v56 = vpop.f32.mrb[24].mxu1  ;;  %v1023_v0 = vsub.f32 %v2770_v15, %v979_v62  ;;  %v1038_v4 = vmul.f32 1.442695, %v1022_v2 }
 0x2d6   : > { %v1993_v57 = vpop.f32.mrb[25].mxu1  ;;  %v1016_v58 = vsel %vm597_vm1, %v2823_v56, -inf }
 0x2d7   : > { %1017 = vmax.xlane.f32.xlu1 %v1016_v58  ;;  %v2827_v59 = vpop.f32.mrb[26].mxu1  ;;  %v1040_v3 = vmul.f32 1.442695, %v1023_v0 }
 0x2d8   : > { %v1994_v60 = vpop.f32.mrb[27].mxu1  ;;  %v1019_v61 = vsel %vm597_vm1, %v2827_v59, -inf }
 0x2d9   : > { %1020 = vmax.xlane.f32.xlu0 %v1019_v61  ;;  %2222 = vpow2.f32 %v1040_v3 }
 0x2da   : > { %2224 = vpow2.f32 %v1038_v4 }
 0x2e3   : > { %v2839_v5 = vpop.eup %2222 }
 0x2e4   : > { %v2841_v6 = vpop.eup %2224  ;;  %v1073_v7 = vsel %vm597_vm1, %v2839_v5, 0.0 }
 0x2e5   : > { %v1070_v8 = vsel %vm597_vm1, %v2841_v6, 0.0 }
 0x2e8   : > { %582 = vrot.lane.b32.xlu1 %v2725_v53, %s2457_s28 }
 0x2ec   : > { %585 = vrot.lane.b32.xlu1 %v2725_v53, %s2456_s10 }
 0x2ef   : > { %579 = vrot.lane.b32.xlu0 %v2725_v53, %s2454_s12 }
 0x30e   : > { %1074 = vadd.xlane.f32.xlu0 %v1073_v7 }
 0x310   : > { %1071 = vadd.xlane.f32.xlu1 %v1070_v8 }
 0x344   : > { %v982_v9 = vpop.xlane.xlu0 %981 }
 0x345   : > { %v1024_v10 = vsub.f32 %v2775_v19, %v982_v9 }
 0x347   : > { %v1042_v11 = vmul.f32 1.442695, %v1024_v10 }
 0x348   : > { %v985_v12 = vpop.xlane.xlu0 %984 }
 0x349   : > { %2226 = vpow2.f32 %v1042_v11  ;;  %v1025_v13 = vsub.f32 %v2779_v22, %v985_v12 }
 0x34b   : > { %v1044_v14 = vmul.f32 1.442695, %v1025_v13 }
 0x34c   : > { %v1000_v15 = vpop.xlane.xlu1 %999 }
 0x34d   : > { %2228 = vpow2.f32 %v1044_v14  ;;  %v1030_v16 = vsub.f32 %v2785_v26, %v1000_v15 }
 0x34e   : > { %v1003_v17 = vpop.xlane.xlu0 %1002 }
 0x34f   : > { %v1054_v18 = vmul.f32 1.442695, %v1030_v16  ;;  %v1031_v20 = vsub.f32 %v2789_v30, %v1003_v17 }
 0x350   : > { %v988_v21 = vpop.xlane.xlu1 %987 }
 0x351   : > { %2230 = vpow2.f32 %v1054_v18  ;;  %v1056_v23 = vmul.f32 1.442695, %v1031_v20  ;;  %v1026_v24 = vsub.f32 %v2783_v25, %v988_v21 }
 0x352   : > { %v991_v19 = vpop.xlane.xlu0 %990 }
 0x353   : > { %v2852_v27 = vpop.eup %2226  ;;  %2232 = vpow2.f32 %v1056_v23  ;;  %v1046_v28 = vmul.f32 1.442695, %v1026_v24  ;;  %v1027_v22 = vsub.f32 %v2791_v31, %v991_v19 }
 0x354   : > { %v1012_v29 = vpop.xlane.xlu1 %1011  ;;  %v1076_v26 = vsel %vm597_vm1, %v2852_v27, 0.0 }
 0x355   : > { %2234 = vpow2.f32 %v1046_v28  ;;  %v1048_v32 = vmul.f32 1.442695, %v1027_v22  ;;  %v1034_v30 = vsub.f32 %v2799_v37, %v1012_v29  ;;  %1077 = vadd.xlane.f32.xlu1 %v1076_v26 }
 0x356   : > { %v1015_v33 = vpop.xlane.xlu0 %1014 }
 0x357   : > { %v2858_v34 = vpop.eup %2228  ;;  %2236 = vpow2.f32 %v1048_v32  ;;  %v1062_v25 = vmul.f32 1.442695, %v1034_v30  ;;  %v1035_v35 = vsub.f32 %v2805_v42, %v1015_v33 }
 0x358   : > { %v994_v36 = vpop.xlane.xlu1 %993  ;;  %v1079_v31 = vsel %vm597_vm1, %v2858_v34, 0.0 }
 0x359   : > { %2238 = vpow2.f32 %v1062_v25  ;;  %v1064_v39 = vmul.f32 1.442695, %v1035_v35  ;;  %v1028_v40 = vsub.f32 %v2801_v38, %v994_v36  ;;  %1080 = vadd.xlane.f32.xlu0 %v1079_v31 }
 0x35a   : > { %v997_v41 = vpop.xlane.xlu0 %996 }
 0x35b   : > { %v2864_v44 = vpop.eup %2230  ;;  %2240 = vpow2.f32 %v1064_v39  ;;  %v1050_v37 = vmul.f32 1.442695, %v1028_v40  ;;  %v1029_v45 = vsub.f32 %v2807_v43, %v997_v41 }
 0x35c   : > { %v1006_v46 = vpop.xlane.xlu1 %1005  ;;  %v1094_v42 = vsel %vm597_vm1, %v2864_v44, 0.0 }
 0x35d   : > { %v2869_v47 = vpop.eup %2232  ;;  %2242 = vpow2.f32 %v1050_v37  ;;  %v1052_v48 = vmul.f32 1.442695, %v1029_v45  ;;  %v1032_v50 = vsub.f32 %v2815_v49, %v1006_v46  ;;  %1095 = vadd.xlane.f32.xlu1 %v1094_v42 }
 0x35e   : > { %v1097_v38 = vsel %vm597_vm1, %v2869_v47, 0.0  ;;  %v1009_v11 = vpop.xlane.xlu0 %1008 }
 0x35f   : > { %v2874_v51 = vpop.eup %2234  ;;  %2244 = vpow2.f32 %v1052_v48  ;;  %v1058_v54 = vmul.f32 1.442695, %v1032_v50  ;;  %1098 = vadd.xlane.f32.xlu0 %v1097_v38  ;;  %v1033_v12 = vsub.f32 %v2819_v52, %v1009_v11 }
 0x360   : > { %v1082_v43 = vsel %vm597_vm1, %v2874_v51, 0.0 }
 0x361   : > { %v2878_v55 = vpop.eup %2236  ;;  %2246 = vpow2.f32 %v1058_v54  ;;  %1083 = vadd.xlane.f32.xlu1 %v1082_v43  ;;  %v1060_v14 = vmul.f32 1.442695, %v1033_v12 }
 0x362   : > { %v1085_v57 = vsel %vm597_vm1, %v2878_v55, 0.0 }
 0x363   : > { %v2882_v49 = vpop.eup %2238  ;;  %1086 = vadd.xlane.f32.xlu0 %v1085_v57 }
 0x364   : > { %v1018_v58 = vpop.xlane.xlu1 %1017  ;;  %v1106_v60 = vsel %vm597_vm1, %v2882_v49, 0.0 }
 0x365   : > { %v2886_v61 = vpop.eup %2240  ;;  %v1036_v62 = vsub.f32 %v2823_v56, %v1018_v58  ;;  %1107 = vadd.xlane.f32.xlu1 %v1106_v60 }
 0x366   : > { %v1109_v63 = vsel %vm597_vm1, %v2886_v61, 0.0  ;;  %v1021_v13 = vpop.xlane.xlu0 %1020 }
 0x367   : > { %v2891_v0 = vpop.eup %2242  ;;  %v1066_v2 = vmul.f32 1.442695, %v1036_v62  ;;  %1110 = vadd.xlane.f32.xlu0 %v1109_v63  ;;  %v1037_v15 = vsub.f32 %v2827_v59, %v1021_v13 }
 0x368   : > { %v1088_v3 = vsel %vm597_vm1, %v2891_v0, 0.0  ;;  %v583_v17 = vpop.permute.xlu1 %582 }
 0x369   : > { %v2895_v4 = vpop.eup %2244  ;;  %2248 = vpow2.f32 %v1066_v2  ;;  %1089 = vadd.xlane.f32.xlu1 %v1088_v3  ;;  %v1068_v16 = vmul.f32 1.442695, %v1037_v15 }
 0x36a   : > { %v1091_v7 = vsel %vm597_vm1, %v2895_v4, 0.0  ;;  %2250 = vpow2.f32 %v1060_v14  ;;  %v580_v18 = vpop.permute.xlu0 %579 }
 0x36b   : > { %v2899_v8 = vpop.eup %2246  ;;  %1092 = vadd.xlane.f32.xlu0 %v1091_v7  ;;  %2252 = vpow2.f32 %v1068_v16 }
 0x36c   : > { %v1100_v56 = vsel %vm597_vm1, %v2899_v8, 0.0  ;;  %v586_v20 = vpop.permute.xlu1 %585 }
 0x36d   : > { %1101 = vadd.xlane.f32.xlu1 %v1100_v56 }
 0x373   : > { %v2903_v9 = vpop.eup %2248 }
 0x374   : > { %v1112_v10 = vsel %vm597_vm1, %v2903_v9, 0.0  ;;  %v2913_v23 = vpop.eup %2250 }
 0x375   : > { %1113 = vadd.xlane.f32.xlu1 %v1112_v10  ;;  %v1103_v19 = vsel %vm597_vm1, %v2913_v23, 0.0  ;;  %v2917_v52 = vpop.eup %2252 }
 0x376   : > { %v1115_v59 = vsel %vm597_vm1, %v2917_v52, 0.0 }
 0x381   : > { %588 = vrot.lane.b32.xlu0 %v2725_v53, %s2458_s14 }
 0x386   : > { %591 = vrot.lane.b32.xlu1 %v2725_v53, %s2459_s15 }
 0x39b   : > { %v1075_v21 = vpop.xlane.xlu0 %1074 }
 0x39c   : > { %2254 = vrcp.f32 %v1075_v21 }
 0x39d   : > { %v1072_v24 = vpop.xlane.xlu1 %1071 }
 0x39e   : > { %2256 = vrcp.f32 %v1072_v24 }
 0x3a0   : > { %1104 = vadd.xlane.f32.xlu0 %v1103_v19 }
 0x3a4   : > { %1116 = vadd.xlane.f32.xlu0 %v1115_v59 }
 0x3a6   : > { %v2255_v28 = vpop.eup %2254 }
 0x3a7   : > { %v1135_v29 = vmul.f32 %v2255_v28, %v2839_v5 }
 0x3a8   : > { %v2257_v22 = vpop.eup %2256 }
 0x3a9   : > { %v1134_v26 = vmul.f32 %v2257_v22, %v2841_v6 }
 0x3ab   : > { %v1150_v32 = vpack.c.bf16 %v1135_v29, %v1134_v26 }
 0x3ad   : > { %1998 = vmatmul.mubr.msk.bf16.vlgmr.msra.gmra.mrb[12].mxu0 %vm597_vm1, %v1150_v32 }
 0x3ae   : > { %2008 = vmatpush3.bf16.msra.mxu0 %v580_v18  ;;  %2009 = vmatprep.mubr.msk.bf16.mxu0 %vm2453_vm0, %v2452_v1 }
 0x3af   : > { %2019 = vmatprep.subr.bf16.mxu0 %v2452_v1 }
 0x3ba   : > { %594 = vrot.lane.b32.xlu0 %v2725_v53, %s2460_s30 }
 0x3e2   : > { %v1078_v30 = vpop.xlane.xlu1 %1077 }
 0x3e3   : > { %2258 = vrcp.f32 %v1078_v30 }
 0x3e6   : > { %v1081_v33 = vpop.xlane.xlu0 %1080 }
 0x3e7   : > { %2260 = vrcp.f32 %v1081_v33 }
 0x3ea   : > { %v1096_v25 = vpop.xlane.xlu1 %1095 }
 0x3ec   : > { %v1099_v5 = vpop.xlane.xlu0 %1098 }
 0x3ed   : > { %v2259_v6 = vpop.eup %2258 }
 0x3ee   : > { %v1084_v35 = vpop.xlane.xlu1 %1083  ;;  %v1136_v39 = vmul.f32 %v2259_v6, %v2852_v27  ;;  %v2214_v6 = vld [vmem:[#allocation7] sm:$0xff]  }
 0x3ef   : > { %2262 = vrcp.f32 %v1084_v35 }
 0x3f0   : > { %v1087_v36 = vpop.xlane.xlu0 %1086 }
 0x3f1   : > { %v2261_v31 = vpop.eup %2260  ;;  %2264 = vrcp.f32 %v1087_v36 }
 0x3f2   : > { %v1137_v40 = vmul.f32 %v2261_v31, %v2858_v34  ;;  %v1108_v41 = vpop.xlane.xlu1 %1107  ;;  %2266 = vrcp.f32 %v1099_v5 }
 0x3f3   : > { %2268 = vrcp.f32 %v1096_v25 }
 0x3f4   : > { %v1111_v37 = vpop.xlane.xlu0 %1110  ;;  %v1151_v45 = vpack.c.bf16 %v1137_v40, %v1136_v39 }
 0x3f6   : > { %v1090_v53 = vpop.xlane.xlu1 %1089  ;;  %2004 = vmatmul.mubr.msk.bf16.vlgmr.msra.gmra.mrb[28].mxu1 %vm597_vm1, %v1151_v45 }
 0x3f7   : > { %2270 = vrcp.f32 %v1090_v53  ;;  %2014 = vmatpush3.bf16.msra.mxu1 %v583_v17  ;;  %2015 = vmatprep.mubr.msk.bf16.mxu1 %vm2453_vm0, %v2452_v1 }
 0x3f8   : > { %v1093_v46 = vpop.xlane.xlu0 %1092  ;;  %2025 = vmatprep.subr.bf16.mxu1 %v2452_v1 }
 0x3f9   : > { %v2263_v42 = vpop.eup %2262  ;;  %2272 = vrcp.f32 %v1093_v46 }
 0x3fa   : > { %v1138_v34 = vmul.f32 %v2263_v42, %v2874_v51  ;;  %2274 = vrcp.f32 %v1111_v37  ;;  %v1102_v50 = vpop.xlane.xlu1 %1101  ;;  %v2216_v42 = vld [vmem:[#allocation7 + $0x10] sm:$0xff]  }
 0x3fb   : > { %v2265_v27 = vpop.eup %2264  ;;  %2276 = vrcp.f32 %v1108_v41  ;;  %v2215_v41 = vld [vmem:[#allocation7 + $0x8] sm:$0xff]  }
 0x3fc   : > { %v1139_v48 = vmul.f32 %v2265_v27, %v2878_v55  ;;  %v2267_v54 = vpop.eup %2266  ;;  %v589_v10 = vpop.permute.xlu0 %588  ;;  %2278 = vrcp.f32 %v1102_v50  ;;  %v2217_v50 = vld [vmem:[#allocation7 + $0x18] sm:$0xff]  }
 0x3fd   : > { %v2269_v43 = vpop.eup %2268  ;;  %v1143_v58 = vmul.f32 %v2267_v54, %v2869_v47 }
 0x3fe   : > { %v1152_v38 = vpack.c.bf16 %v1139_v48, %v1138_v34  ;;  %v1142_v55 = vmul.f32 %v2269_v43, %v2864_v44  ;;  %v2218_v43 = vld [vmem:[#allocation7 + $0x20] sm:$0xff]  }
 0x400   : > { %2010 = vmatmul.mubr.msk.bf16.vlgmr.msra.gmra.mrb[16].mxu0 %vm597_vm1, %v1152_v38  ;;  %v1154_v7 = vpack.c.bf16 %v1143_v58, %v1142_v55  ;;  %v2220_v58 = vld [vmem:[#allocation7 + $0x30] sm:$0xff]   ;;  %v2221_v55 = vld [vmem:[#allocation7 + $0x38] sm:$0xff]  }
 0x401   : > { %v2271_v57 = vpop.eup %2270  ;;  %2020 = vmatpush3.bf16.msra.mxu0 %v586_v20  ;;  %2021 = vmatprep.mubr.msk.bf16.mxu0 %vm2453_vm0, %v2452_v1 }
 0x402   : > { %v1114_v60 = vpop.xlane.xlu1 %1113  ;;  %2031 = vmatprep.subr.bf16.mxu0 %v2452_v1  ;;  %v1140_v62 = vmul.f32 %v2271_v57, %v2891_v0  ;;  %v2219_v57 = vld [vmem:[#allocation7 + $0x28] sm:$0xff]  }
 0x403   : > { %v2273_v51 = vpop.eup %2272 }
 0x404   : > { %v1141_v63 = vmul.f32 %v2273_v51, %v2895_v4  ;;  %v2275_v56 = vpop.eup %2274 }
 0x405   : > { %v2277_v47 = vpop.eup %2276  ;;  %v1147_v11 = vmul.f32 %v2275_v56, %v2886_v61 }
 0x406   : > { %v592_v2 = vpop.permute.xlu1 %591  ;;  %v1153_v3 = vpack.c.bf16 %v1141_v63, %v1140_v62  ;;  %v1146_v44 = vmul.f32 %v2277_v47, %v2882_v49  ;;  %v2279_v12 = vpop.eup %2278 }
 0x407   : > { %v1144_v14 = vmul.f32 %v2279_v12, %v2899_v8 }
 0x408   : > { %2016 = vmatmul.mubr.msk.bf16.vlgmr.msra.gmra.mrb[32].mxu1 %vm597_vm1, %v1153_v3  ;;  %2022 = vmatmul.mubr.msk.bf16.vlgmr.msra.gmra.mrb[20].mxu0 %vm597_vm1, %v1154_v7  ;;  %v1156_v0 = vpack.c.bf16 %v1147_v11, %v1146_v44 }
 0x409   : > { %2026 = vmatpush3.bf16.msra.mxu1 %v589_v10  ;;  %2032 = vmatpush3.bf16.msra.mxu0 %v592_v2 }
 0x40a   : > { %2033 = vmatprep.mubr.msk.bf16.mxu0 %vm2453_vm0, %v2452_v1  ;;  %2027 = vmatprep.mubr.msk.bf16.mxu1 %vm2453_vm0, %v2452_v1 }
 0x40b   : > { %2037 = vmatprep.subr.bf16.mxu1 %v2452_v1  ;;  %2043 = vmatprep.subr.bf16.mxu0 %v2452_v1 }
 0x410   : > { %2034 = vmatmul.mubr.msk.bf16.vlgmr.msra.gmra.mrb[24].mxu0 %vm597_vm1, %v1156_v0 }
 0x411   : > { %2059 = vmatprep.mubr.msk.bf16.mxu0 %vm2453_vm0, %v2452_v1  ;;  %2044 = vmatpush3.bf16.msra.mxu0 %v2214_v6 }
 0x412   : > { %2045 = vmatprep.subr.bf16.mxu0 %v2452_v1 }
 0x415   : > { %2046 = vmatpush3.bf16.msra.mxu0 %v2215_v41 }
 0x416   : > { %2047 = vmatprep.subr.bf16.mxu0 %v2452_v1 }
 0x419   : > { %2048 = vmatpush3.bf16.msra.mxu0 %v2216_v42 }
 0x41a   : > { %2049 = vmatprep.subr.bf16.mxu0 %v2452_v1 }
 0x41d   : > { %2050 = vmatpush3.bf16.msra.mxu0 %v2217_v50 }
 0x41e   : > { %2051 = vmatprep.subr.bf16.mxu0 %v2452_v1 }
 0x421   : > { %2052 = vmatpush3.bf16.msra.mxu0 %v2218_v43 }
 0x422   : > { %2053 = vmatprep.subr.bf16.mxu0 %v2452_v1 }
 0x425   : > { %2054 = vmatpush3.bf16.msra.mxu0 %v2219_v57 }
 0x426   : > { %2055 = vmatprep.subr.bf16.mxu0 %v2452_v1 }
 0x429   : > { %2056 = vmatpush3.bf16.msra.mxu0 %v2220_v58 }
 0x42a   : > { %2057 = vmatprep.subr.bf16.mxu0 %v2452_v1 }
 0x42d   : > { %v1105_v61 = vpop.xlane.xlu0 %1104  ;;  %2058 = vmatpush3.bf16.msra.mxu0 %v2221_v55 }
 0x42e   : > { %2280 = vrcp.f32 %v1105_v61 }
 0x431   : > { %v1117_v4 = vpop.xlane.xlu0 %1116 }
 0x432   : > { %2282 = vrcp.f32 %v1117_v4 }
 0x433   : > { %2284 = vrcp.f32 %v1114_v60 }
 0x435   : > { %v595_v17 = vpop.permute.xlu0 %594 }
 0x438   : > { %v2281_v13 = vpop.eup %2280 }
 0x439   : > { %v1145_v15 = vmul.f32 %v2281_v13, %v2913_v23 }
 0x43b   : > { %v1155_v16 = vpack.c.bf16 %v1145_v15, %v1144_v14 }
 0x43c   : > { %v2283_v49 = vpop.eup %2282 }
 0x43d   : > { %2028 = vmatmul.mubr.msk.bf16.vlgmr.msra.gmra.mrb[36].mxu1 %vm597_vm1, %v1155_v16  ;;  %v2285_v18 = vpop.eup %2284  ;;  %v1149_v20 = vmul.f32 %v2283_v49, %v2917_v52 }
 0x43e   : > { %2038 = vmatpush3.bf16.msra.mxu1 %v595_v17  ;;  %2039 = vmatprep.mubr.msk.bf16.mxu1 %vm2453_vm0, %v2452_v1  ;;  %v1148_v21 = vmul.f32 %v2285_v18, %v2903_v9 }
 0x440   : > { %v1157_v24 = vpack.c.bf16 %v1149_v20, %v1148_v21 }
 0x445   : > { %2040 = vmatmul.mubr.msk.bf16.vlgmr.msra.gmra.mrb[40].mxu1 %vm597_vm1, %v1157_v24 }
 0x480   : > { %v2966_v8 = vpop.f32.mrb[12].mxu0 }
 0x481   : > { %v1999_v23 = vpop.f32.mrb[13].mxu0 }
 0x482   : > { %v2968_v19 = vpop.f32.mrb[14].mxu0 }
 0x483   : > { %v2000_v59 = vpop.f32.mrb[15].mxu0 }
 0x4c9   : > { %v1239_v28 = vpop.f32.mrb[28].mxu1 }
 0x4ca   : > { %v2005_v22 = vpop.f32.mrb[29].mxu1 }
 0x4cb   : > { %v1242_v29 = vpop.f32.mrb[30].mxu1 }
 0x4cc   : > { %v2146_v26 = vpack.i.bf16 %v1242_v29, %v1239_v28  ;;  %v2006_v32 = vpop.f32.mrb[31].mxu1 }
 0x4ce   : > { %2147 = vrot.lane.b32.xlu1 %v2146_v26, %s2460_s30 }
 0x4d3   : > { %v1283_v30 = vpop.f32.mrb[16].mxu0 }
 0x4d4   : > { %v2011_v52 = vpop.f32.mrb[17].mxu0 }
 0x4d5   : > { %v1286_v33 = vpop.f32.mrb[18].mxu0 }
 0x4d6   : > { %v2151_v9 = vpack.i.bf16 %v1286_v33, %v1283_v30  ;;  %v2012_v25 = vpop.f32.mrb[19].mxu0 }
 0x4d8   : > { %2152 = vrot.lane.b32.xlu0 %v2151_v9, %s2459_s15 }
 0x4db   : > { %v1327_v5 = vpop.f32.mrb[32].mxu1  ;;  %v1371_v35 = vpop.f32.mrb[20].mxu0 }
 0x4dc   : > { %v2017_v36 = vpop.f32.mrb[33].mxu1  ;;  %v2023_v31 = vpop.f32.mrb[21].mxu0 }
 0x4dd   : > { %v1330_v39 = vpop.f32.mrb[34].mxu1  ;;  %v1374_v40 = vpop.f32.mrb[22].mxu0 }
 0x4de   : > { %v2156_v37 = vpack.i.bf16 %v1330_v39, %v1327_v5  ;;  %v2161_v45 = vpack.i.bf16 %v1374_v40, %v1371_v35  ;;  %v2018_v53 = vpop.f32.mrb[35].mxu1  ;;  %v2024_v46 = vpop.f32.mrb[23].mxu0  ;;  %v1861_v39 = vld [vmem:[%s3046_s4] ss:$0 sm:$0xff] }
 0x4e0   : > { %2162 = vrot.lane.b32.xlu0 %v2161_v45, %s2456_s10  ;;  %2157 = vrot.lane.b32.xlu1 %v2156_v37, %s2458_s14  ;;  %s2461_s10 = smov [#allocation8]  }
 0x4e3   : > { %v1459_v27 = vpop.f32.mrb[24].mxu0 }
 0x4e4   : > { %v2035_v34 = vpop.f32.mrb[25].mxu0 }
 0x4e5   : > { %v1462_v48 = vpop.f32.mrb[26].mxu0 }
 0x4e6   : > { %v2171_v38 = vpack.i.bf16 %v1462_v48, %v1459_v27  ;;  %v2036_v54 = vpop.f32.mrb[27].mxu0 }
 0x4e8   : > { %2172 = vrot.lane.b32.xlu0 %v2171_v38, %s2454_s12  ;;  %s2998_s12 = scalar_lea.hbm %s3047_s5, %s1876_s9 }
 0x510   : > { %v1415_v60 = vpop.f32.mrb[36].mxu1 }
 0x511   : > { %v2029_v51 = vpop.f32.mrb[37].mxu1 }
 0x512   : > { %v1418_v62 = vpop.f32.mrb[38].mxu1 }
 0x513   : > { %v2166_v63 = vpack.i.bf16 %v1418_v62, %v1415_v60  ;;  %v2030_v2 = vpop.f32.mrb[39].mxu1 }
 0x515   : > { %2167 = vrot.lane.b32.xlu1 %v2166_v63, %s2457_s28  ;;  %s2376_s28 = sshll.u32 %s2461_s10, 4  ;;  %s2377_s28 = int_to_ptr.vmem [resolvable:$false] %s2376_s28 }
 0x516   : > { %s2378_s14 = scalar_lea.vmem %s2377_s28, 512  ;;  %p2379_p5 = scmp.lt.s32.totalorder %s2993_s8, %s2377_s28 }
 0x517   : > { %p2380_p9 = scmp.lt.s32.totalorder %s2378_s14, %s2372_s22 }
 0x518   : > { %v1503_v3 = vpop.f32.mrb[40].mxu1 }
 0x519   : > { %v2041_v7 = vpop.f32.mrb[41].mxu1  ;;  %p2381_p12 = por %p2380_p9, %p2379_p5 }
 0x51a   : > { %v1506_v56 = vpop.f32.mrb[42].mxu1 }
 0x51b   : > { %v2176_v10 = vpack.i.bf16 %v1506_v56, %v1503_v3  ;;  %v2042_v47 = vpop.f32.mrb[43].mxu1  ;;  %p2382_p2 = pnand %p2381_p12, %p2375_p3 }
 0x51d   : > { %2177 = vrot.lane.b32.xlu1 %v2176_v10, %s2455_s13  ;;  %s1702_s13 = scalar_lea.sflag [#allocation4], %s2672_s17 }
 0x540   : > { %v2148_v11 = vpop.permute.xlu1 %2147 }
 0x541   : > { %v2150_v61 = vunpack.i.h.bf16 %v2148_v11  ;;  %v2149_v1 = vunpack.i.l.bf16 %v2148_v11 }
 0x543   : > { %v1567_v49 = vsel %vm597_vm1, %v2968_v19, %v2150_v61  ;;  %v1566_v17 = vsel %vm597_vm1, %v2966_v8, %v2149_v1 }
 0x54a   : > { %v2153_v44 = vpop.permute.xlu0 %2152 }
 0x54b   : > { %v2155_v4 = vunpack.i.h.bf16 %v2153_v44  ;;  %v2154_v12 = vunpack.i.l.bf16 %v2153_v44 }
 0x54d   : > { %v1569_v18 = vsel %vm1568_vm2, %v1566_v17, %v2154_v12  ;;  %v1570_v20 = vsel %vm1568_vm2, %v1567_v49, %v2155_v4 }
 0x552   : > { %v2158_v0 = vpop.permute.xlu1 %2157  ;;  %v2163_v13 = vpop.permute.xlu0 %2162 }
 0x553   : > { %v2160_v14 = vunpack.i.h.bf16 %v2158_v0  ;;  %v2159_v15 = vunpack.i.l.bf16 %v2158_v0  ;;  %v2165_v21 = vunpack.i.h.bf16 %v2163_v13  ;;  %v2164_v24 = vunpack.i.l.bf16 %v2163_v13 }
 0x555   : > { %v1573_v23 = vsel %vm1571_vm3, %v1570_v20, %v2160_v14  ;;  %v1572_v59 = vsel %vm1571_vm3, %v1569_v18, %v2159_v15 }
 0x556   : > { %v1575_v26 = vsel %vm1574_vm4, %v1572_v59, %v2164_v24  ;;  %v1576_v32 = vsel %vm1574_vm4, %v1573_v23, %v2165_v21 }
 0x55a   : > { %v2173_v29 = vpop.permute.xlu0 %2172 }
 0x55b   : > { %v2175_v19 = vunpack.i.h.bf16 %v2173_v29  ;;  %v2174_v8 = vunpack.i.l.bf16 %v2173_v29 }
 0x587   : > { %v2168_v16 = vpop.permute.xlu1 %2167 }
 0x588   : > { %v2170_v28 = vunpack.i.h.bf16 %v2168_v16  ;;  %v2169_v22 = vunpack.i.l.bf16 %v2168_v16 }
 0x58a   : > { %v1579_v30 = vsel %vm1577_vm5, %v1576_v32, %v2170_v28  ;;  %v1578_v52 = vsel %vm1577_vm5, %v1575_v26, %v2169_v22 }
 0x58b   : > { %v1581_v5 = vsel %vm1580_vm6, %v1578_v52, %v2174_v8  ;;  %v1582_v35 = vsel %vm1580_vm6, %v1579_v30, %v2175_v19 }
 0x58f   : > { %v2178_v33 = vpop.permute.xlu1 %2177 }
 0x590   : > { %v2180_v9 = vunpack.i.h.bf16 %v2178_v33  ;;  %v2179_v25 = vunpack.i.l.bf16 %v2178_v33 }
 0x592   : > { %v1585_v6 = vsel %vm1583_vm7, %v1582_v35, %v2180_v9  ;;  %v1584_v36 = vsel %vm1583_vm7, %v1581_v5, %v2179_v25 }
 0x593   : > { %v1586_v31 = vpack.c.bf16 %v1585_v6, %v1584_v36 }
 0x595   : > { %2060 = vmatmul.mubr.bf16.vlgmr.msra.gmra.mrb[28].mxu0 %v1586_v31 }
 0x668   : > { %v1692_v40 = vpop.f32.mrb[28].mxu0 }
 0x669   : > { %v1693_v41 = vadd.f32 %v1861_v39, %v1692_v40  ;;  %v2061_v37 = vpop.f32.mrb[29].mxu0 }
 0x66a   : > { %v1695_v45 = vpop.f32.mrb[30].mxu0 }
 0x66b   : > { %1699 = vst [vmem:[%s271_s6] sm:$0xff] %v1693_v41  ;;  %v1696_v53 = vadd.f32 %v1861_v39, %v1695_v45  ;;  %v2062_v46 = vpop.f32.mrb[31].mxu0 }
 0x66d   : > { %1700 = vst [vmem:[%s271_s6 + $0x8] sm:$0xff] %v1696_v53 }
 0x66e   : > { %2385 = shalt.err (!%p2382_p2)
}
 0x66f   : > { %s2386_s15 = scalar_lea.hbm %s2998_s12, 256  ;;  %s2390_s23 = scalar_lea.hbm %s3047_s5, 512 }
 0x670   : > { %p2387_p13 = scmp.ne.s32.totalorder %s2998_s12, %s2386_s15  ;;  %p2391_p4 = scmp.lt.u32.totalorder %s2998_s12, %s3047_s5 }
 0x671   : > { %p2392_p7 = scmp.lt.u32.totalorder %s2390_s23, %s2386_s15  ;;  %p2394_p11 = scmp.lt.u32.totalorder %s2386_s15, %s2998_s12 }
 0x672   : > { %p2388_p6 = pnand %p2387_p13, %p3061_p0 }
 0x673   : > { %p2393_p8 = por %p2392_p7, %p2391_p4 }
 0x674   : > { %p2389_p10 = pneg %p2388_p6 }
 0x675   : > { %p2395_p1 = por %p2394_p11, %p2393_p8 }
 0x677   : > { %p2396_p3 = pnand %p2395_p1, %p2389_p10 }
 0x679   : > { %2399 = shalt.err (!%p2396_p3)
}
 0x67a   : > { %s2462_s9 = smov 128   ;;  %s2463_s24 = smov 8  }
 0x67b   : > { %2073 = dma.vmem_to_hbm [thread:$0]  (%p3061_p0), %s2993_s8, 256, %s2998_s12, %s1702_s13, %s2462_s9, %s2462_s9, %s2463_s24  }
 0x67c PF: > { %s1730_s26 = sand.u32 1, %s2430_s18   ;;  %p3062_p5 = scmp.ne.s32.totalorder %s3052_s25, 0 }
 0x67d   : > { %p3063_p9 = scmp.ge.s32.totalorder %s2442_s21, 2  ;;  %s1731_s22 = scalar_lea.sflag [#allocation4], %s1730_s26 }
 0x67f   : > { %p2087_p12 = pnand %p3063_p9, %p3062_p5 }
 0x681   : > { %2425 = dma.done.wait (!%p2087_p12), %s1731_s22, 256  }
 0x682   : > { %2427 = vsyncadd (!%p2087_p12), %s1731_s22, 4294967040  ;;  %p19_p2 = scmp.ge.s32.totalorder %s2607_s16, 4   ;;  %s3064_s18 = smov %s2434_s19 }
 0x683   : > { %s3065_s19 = smov %s2438_s20  ;;  %s3066_s20 = smov %s2616_s27 }
 0x684   : > { %s3067_s21 = smov %s2607_s16  ;;  %21 = sbr.rel (!%p19_p2) target bundleno = 6 (0x6), region = 93 }
 0x68b   :  { %1736 = vsyncpa [#allocation3], 1 }
 0x68c   :  { %1738 = vsyncpa [#allocation3 + $0x1], 1 }
 0x68d   :  { %1739 = vsyncpa [#allocation6], 1 }
 0x68e   :  { %1740 = vsyncpa [#allocation4], 1 }
 0x68f   :  { %1742 = vsyncpa [#allocation4 + $0x1], 1 }

</bundles_post_ra>
